<compile_context>
chip_gen: v7x
topology: tpu7x:2x2x1
jax: 0.10.0
libtpu: 0.0.40
codegen_flags: <defaults>
</compile_context>

<pallas_src>
from functools import partial

import jax
import jax.numpy as jnp
from jax import lax
from jax.experimental import pallas as pl
from jax.experimental.pallas import tpu as pltpu

EPS = 1e-5          # nn.BatchNorm2d default eps
NEG_SLOPE = 0.01    # nn.LeakyReLU default negative_slope


def _leaky_relu(v):
    return jnp.where(v >= 0, v, NEG_SLOPE * v)


def conv_block1_kernel(x_ref, w1_ref, w2_ref, prm_ref, csum_ref, cbcast_ref,
                       out_ref, *, H, inv_count):
    """Fused ConvBlock1 forward on lane-dense rows.

    Layout: rows = (n, h) with M = N*H; lane axis = W*C (w-major, c-minor).
      x_ref     (M, W*Cin)    f32  input rows
      w1_ref    (3*W*Cin,  W*Cout) bf16  banded conv1 weights (ky-major rows)
      w2_ref    (3*W*Cout, W*Cout) bf16  banded conv2 weights (ky-major rows)
      prm_ref   (8, W*Cout)   f32  rows 0..5 = b1, g1, be1, b2, g2, be2
      csum_ref  (W*Cout, Cout) f32 lane -> channel sum matrix
      cbcast_ref(Cout, W*Cout) f32 channel -> lane broadcast matrix
      out_ref   (M, W*Cout)   f32
    """
    f32, bf16 = jnp.float32, jnp.bfloat16
    M, K1 = x_ref.shape            # K1 = W*Cin
    WC = out_ref.shape[1]          # W*Cout

    prm = prm_ref[...]
    csum = csum_ref[...]
    cbcast = cbcast_ref[...]

    def ky_taps(v):
        """Rows h-1 / h+1 of v, zero across the H image boundary.

        pltpu.roll runs on the XLU and the mask on the VPU -- no MXU work and
        no (M, M) operands.  Wrap-around rows are killed by the same mask."""
        h = lax.broadcasted_iota(jnp.int32, v.shape, 0) % H
        up = jnp.where(h != 0, pltpu.roll(v, 1, axis=0), 0.0)          # row h-1
        dn = jnp.where(h != H - 1, pltpu.roll(v, M - 1, axis=0), 0.0)  # row h+1
        return up, dn

    def bn_leaky(v, gamma, beta):
        """Train-mode BatchNorm (biased batch variance) + LeakyReLU, all f32.

        Stats are one pass: per-lane sum & sum-of-squares packed into a single
        (2, WC) operand, reduced to per-channel with the factored projector
        (one K=WC and one K=C matmul), then lane-replicated."""
        s1 = jnp.sum(v, axis=0, keepdims=True)
        s2 = jnp.sum(v * v, axis=0, keepdims=True)
        stats = jnp.concatenate([s1, s2], axis=0)                    # (2, WC)
        per_c = jnp.dot(stats, csum, preferred_element_type=f32)     # (2, C)
        lane = jnp.dot(per_c, cbcast, preferred_element_type=f32)    # (2, WC)
        mean = lane[0:1, :] * inv_count
        var = lane[1:2, :] * inv_count - mean * mean                 # biased
        scale = gamma * lax.rsqrt(var + EPS)
        shift = beta - mean * scale
        u = v * scale + shift
        return jnp.where(u >= 0, u, NEG_SLOPE * u)

    # ---- conv1: ky taps via roll+mask; kx taps and W-edge zero padding are
    #      folded into the banded weight; three accumulated bf16 matmuls ----
    x = x_ref[...].astype(f32)
    x_up, x_dn = ky_taps(x)
    y = jnp.dot(x_up.astype(bf16), w1_ref[0:K1, :], preferred_element_type=f32)
    y += jnp.dot(x.astype(bf16), w1_ref[K1:2 * K1, :], preferred_element_type=f32)
    y += jnp.dot(x_dn.astype(bf16), w1_ref[2 * K1:3 * K1, :], preferred_element_type=f32)
    y += prm[0:1, :]                                   # conv1 bias

    # ---- bn1 (batch statistics) + leaky relu ----
    a1 = bn_leaky(y, prm[1:2, :], prm[2:3, :])

    # ---- conv2: same roll+mask ky taps on a1; three accumulated K=WC matmuls
    #      against static row-slices of the banded w2 (no lane concat) ----
    a_up, a_dn = ky_taps(a1)
    z = jnp.dot(a_up.astype(bf16), w2_ref[0:WC, :], preferred_element_type=f32)
    z += jnp.dot(a1.astype(bf16), w2_ref[WC:2 * WC, :], preferred_element_type=f32)
    z += jnp.dot(a_dn.astype(bf16), w2_ref[2 * WC:3 * WC, :], preferred_element_type=f32)
    z += prm[3:4, :] + y                               # conv2 bias + residual

    # ---- bn2 + leaky relu, full-width lane-dense store ----
    out_ref[...] = bn_leaky(z, prm[4:5, :], prm[5:6, :])


def prepare_params(params, W):
    """One-time (per parameter set) preprocessing -- hoisted out of the hot path."""
    w1, b1, g1, be1, w2, b2, g2, be2 = params
    f32 = jnp.float32
    Cout, Cin = w1.shape[0], w1.shape[1]
    WC = W * Cout

    # bands[kx, w_in, w_out] = 1 iff w_in == w_out + kx - 1  (W-edge padding baked in)
    bands = jnp.stack([jnp.eye(W, k=1 - kx, dtype=f32) for kx in range(3)])

    def banded(wt, cin):
        # torch OIHW (Cout, cin, 3, 3) -> (3*W*cin, W*Cout); rows ky-major,
        # lanes w-major / c-minor on both sides.  bf16 for the MXU.
        wb = jnp.einsum('oiyx,xuv->yuivo', wt.astype(f32), bands)
        return wb.reshape(3 * W * cin, WC).astype(jnp.bfloat16)

    w1cat = banded(w1, Cin)      # (3*W*Cin,  W*Cout)
    w2cat = banded(w2, Cout)     # (3*W*Cout, W*Cout)

    # six per-channel vectors packed into one (8, WC) operand (rows 6,7 unused)
    tile_lane = lambda v: jnp.tile(v.astype(f32), W)
    prm = jnp.zeros((8, WC), f32)
    prm = prm.at[0].set(tile_lane(b1)).at[1].set(tile_lane(g1)).at[2].set(tile_lane(be1))
    prm = prm.at[3].set(tile_lane(b2)).at[4].set(tile_lane(g2)).at[5].set(tile_lane(be2))

    # factored channel projector: lane->channel sum and channel->lane broadcast
    lane_c = jnp.tile(jnp.arange(Cout), W)
    csum = (lane_c[:, None] == jnp.arange(Cout)[None, :]).astype(f32)   # (WC, Cout)
    cbcast = csum.T                                                     # (Cout, WC)
    return w1cat, w2cat, prm, csum, cbcast


@jax.jit
def conv_block1_apply(x_nchw, prepped):
    """Hot path: lane-dense relayout + one fused pallas_call.  Returns NCHW."""
    w1cat, w2cat, prm, csum, cbcast = prepped
    N, Cin, H, W = x_nchw.shape
    Cout = cbcast.shape[0]
    M, WC = N * H, W * Cout

    # rows = (n, h), lanes = w-major / c-minor
    x_rows = jnp.transpose(x_nchw, (0, 2, 3, 1)).reshape(M, W * Cin).astype(jnp.float32)

    vmem = pl.BlockSpec(memory_space=pltpu.MemorySpace.VMEM)
    out_rows = pl.pallas_call(
        partial(conv_block1_kernel, H=H, inv_count=1.0 / (M * W)),
        out_shape=jax.ShapeDtypeStruct((M, WC), jnp.float32),
        in_specs=[vmem] * 6,
        out_specs=vmem,
    )(x_rows, w1cat, w2cat, prm, csum, cbcast)

    # NHWC (lane-dense) -> NCHW only because the reference/consumer wants NCHW.
    return jnp.transpose(out_rows.reshape(N, H, W, Cout), (0, 3, 1, 2))


def conv_block1(x_nchw, params):
    """Convenience wrapper: param prep + apply (prep should be cached by callers)."""
    return conv_block1_apply(x_nchw, prepare_params(params, x_nchw.shape[3]))


def reference(x_nchw, params):
    """Pure-JAX (XLA, f32) reference matching PyTorch ConvBlock1.forward (train mode)."""
    w1, b1, g1, be1, w2, b2, g2, be2 = params

    def conv(x, w, b):
        y = lax.conv_general_dilated(x, w, (1, 1), ((1, 1), (1, 1)),
                                     dimension_numbers=('NCHW', 'OIHW', 'NCHW'))
        return y + b[None, :, None, None]

    def bn(v, g, be):
        mean = jnp.mean(v, axis=(0, 2, 3), keepdims=True)
        var = jnp.mean((v - mean) ** 2, axis=(0, 2, 3), keepdims=True)
        return ((v - mean) * lax.rsqrt(var + EPS)
                * g[None, :, None, None] + be[None, :, None, None])

    xc = conv(x_nchw, w1, b1)
    a = _leaky_relu(bn(xc, g1, be1))
    z = conv(a, w2, b2) + xc
    return _leaky_relu(bn(z, g2, be2))


if __name__ == "__main__":
    N, Cin, Cout, H, W = 2, 4, 8, 16, 16
    key = jax.random.PRNGKey(0)
    ks = jax.random.split(key, 9)

    x = jax.random.normal(ks[0], (N, Cin, H, W), jnp.float32)
    w1 = 0.2 * jax.random.normal(ks[1], (Cout, Cin, 3, 3), jnp.float32)
    b1 = 0.1 * jax.random.normal(ks[2], (Cout,), jnp.float32)
    g1 = 1.0 + 0.1 * jax.random.normal(ks[3], (Cout,), jnp.float32)
    be1 = 0.1 * jax.random.normal(ks[4], (Cout,), jnp.float32)
    w2 = 0.2 * jax.random.normal(ks[5], (Cout, Cout, 3, 3), jnp.float32)
    b2 = 0.1 * jax.random.normal(ks[6], (Cout,), jnp.float32)
    g2 = 1.0 + 0.1 * jax.random.normal(ks[7], (Cout,), jnp.float32)
    be2 = 0.1 * jax.random.normal(ks[8], (Cout,), jnp.float32)
    params = (w1, b1, g1, be1, w2, b2, g2, be2)

    prepped = prepare_params(params, W)          # one-time glue, hoisted
    out = conv_block1_apply(x, prepped)
    jax.block_until_ready(out)

    ref = reference(x, params)
    assert out.shape == (N, Cout, H, W), out.shape
    # bf16 MXU inputs with f32 accumulation vs. a full-f32 reference: expected
    # max abs error ~1e-2 on these O(1), BN-normalized outputs; a structural
    # bug would show up as O(1) errors.
    max_err = float(jnp.max(jnp.abs(out - ref)))
    assert max_err < 3e-2, f"max abs err {max_err}"
    print("KERNEL_OK")
</pallas_src>

<mosaic_0001>
module attributes {stable_mosaic.version = 11 : i64} {
  func.func @conv_block1_kernel(%arg0: memref<32x64xf32, #tpu.memory_space<vmem>>, %arg1: memref<192x128xbf16, #tpu.memory_space<vmem>>, %arg2: memref<384x128xbf16, #tpu.memory_space<vmem>>, %arg3: memref<8x128xf32, #tpu.memory_space<vmem>>, %arg4: memref<128x8xf32, #tpu.memory_space<vmem>>, %arg5: memref<8x128xf32, #tpu.memory_space<vmem>>, %arg6: memref<32x128xf32, #tpu.memory_space<vmem>>) attributes {dimension_semantics = [], scalar_prefetch = 0 : i64, scratch_operands = 0 : i64, tpu.core_type = #tpu.core_type<tc>} {
    %c0 = arith.constant 0 : index
    %c0_0 = arith.constant 0 : index
    %0 = vector.load %arg3[%c0, %c0_0] : memref<8x128xf32, #tpu.memory_space<vmem>>, vector<8x128xf32>
    %c0_1 = arith.constant 0 : index
    %c0_2 = arith.constant 0 : index
    %1 = vector.load %arg4[%c0_1, %c0_2] : memref<128x8xf32, #tpu.memory_space<vmem>>, vector<128x8xf32>
    %c0_3 = arith.constant 0 : index
    %c0_4 = arith.constant 0 : index
    %2 = vector.load %arg5[%c0_3, %c0_4] : memref<8x128xf32, #tpu.memory_space<vmem>>, vector<8x128xf32>
    %c0_5 = arith.constant 0 : index
    %c0_6 = arith.constant 0 : index
    %3 = vector.load %arg0[%c0_5, %c0_6] : memref<32x64xf32, #tpu.memory_space<vmem>>, vector<32x64xf32>
    %4 = tpu.iota {dimensions = array<i32: 0>} : vector<32x64xi32>
    %c16_i32 = arith.constant 16 : i32
    %c0_i32 = arith.constant 0 : i32
    %5 = arith.cmpi eq, %c16_i32, %c0_i32 : i32
    %c1_i32 = arith.constant 1 : i32
    %6 = arith.select %5, %c1_i32, %c16_i32 : i32
    %7 = vector.broadcast %6 : i32 to vector<32x64xi32>
    %8 = arith.remsi %4, %7 : vector<32x64xi32>
    %c0_i32_7 = arith.constant 0 : i32
    %9 = vector.broadcast %c0_i32_7 : i32 to vector<32x64xi32>
    %10 = arith.cmpi ne, %8, %9 : vector<32x64xi32>
    %c0_i32_8 = arith.constant 0 : i32
    %11 = vector.broadcast %c0_i32_8 : i32 to vector<32x64xi32>
    %12 = arith.cmpi slt, %8, %11 : vector<32x64xi32>
    %c0_i32_9 = arith.constant 0 : i32
    %13 = arith.cmpi slt, %6, %c0_i32_9 : i32
    %14 = vector.broadcast %13 : i1 to vector<32x64xi1>
    %15 = vector.broadcast %14 : vector<32x64xi1> to vector<32x64xi1>
    %16 = arith.xori %12, %15 : vector<32x64xi1>
    %17 = arith.andi %16, %10 : vector<32x64xi1>
    %18 = vector.broadcast %6 : i32 to vector<32x64xi32>
    %19 = arith.addi %8, %18 : vector<32x64xi32>
    %20 = arith.select %17, %19, %8 : vector<32x64xi1>, vector<32x64xi32>
    %c0_i32_10 = arith.constant 0 : i32
    %21 = vector.broadcast %c0_i32_10 : i32 to vector<32x64xi32>
    %22 = arith.cmpi ne, %20, %21 : vector<32x64xi32>
    %c1_i32_11 = arith.constant 1 : i32
    %23 = tpu.dynamic_rotate %3 by %c1_i32_11 dim 0 : vector<32x64xf32>, i32 -> vector<32x64xf32>
    %cst = arith.constant 0.000000e+00 : f32
    %24 = vector.broadcast %cst : f32 to vector<32x64xf32>
    %25 = arith.select %22, %23, %24 : vector<32x64xi1>, vector<32x64xf32>
    %c15_i32 = arith.constant 15 : i32
    %26 = vector.broadcast %c15_i32 : i32 to vector<32x64xi32>
    %27 = arith.cmpi ne, %20, %26 : vector<32x64xi32>
    %c31_i32 = arith.constant 31 : i32
    %28 = tpu.dynamic_rotate %3 by %c31_i32 dim 0 : vector<32x64xf32>, i32 -> vector<32x64xf32>
    %cst_12 = arith.constant 0.000000e+00 : f32
    %29 = vector.broadcast %cst_12 : f32 to vector<32x64xf32>
    %30 = arith.select %27, %28, %29 : vector<32x64xi1>, vector<32x64xf32>
    %31 = arith.truncf %25 : vector<32x64xf32> to vector<32x64xbf16>
    %c0_13 = arith.constant 0 : index
    %c0_14 = arith.constant 0 : index
    %32 = vector.load %arg1[%c0_13, %c0_14] : memref<192x128xbf16, #tpu.memory_space<vmem>>, vector<64x128xbf16>
    %cst_15 = arith.constant dense<0.000000e+00> : vector<32x128xf32>
    %33 = tpu.matmul %31, %32, %cst_15 {dimension_numbers = #tpu.dot_dimension_numbers<[1], [0], [0], [1], [0, 0, 1, 1], [], []>} : vector<32x64xbf16>, vector<64x128xbf16>, vector<32x128xf32> -> vector<32x128xf32>
    %34 = arith.truncf %3 : vector<32x64xf32> to vector<32x64xbf16>
    %c64 = arith.constant 64 : index
    %c0_16 = arith.constant 0 : index
    %35 = vector.load %arg1[%c64, %c0_16] : memref<192x128xbf16, #tpu.memory_space<vmem>>, vector<64x128xbf16>
    %cst_17 = arith.constant dense<0.000000e+00> : vector<32x128xf32>
    %36 = tpu.matmul %34, %35, %cst_17 {dimension_numbers = #tpu.dot_dimension_numbers<[1], [0], [0], [1], [0, 0, 1, 1], [], []>} : vector<32x64xbf16>, vector<64x128xbf16>, vector<32x128xf32> -> vector<32x128xf32>
    %37 = arith.addf %33, %36 : vector<32x128xf32>
    %38 = arith.truncf %30 : vector<32x64xf32> to vector<32x64xbf16>
    %c128 = arith.constant 128 : index
    %c0_18 = arith.constant 0 : index
    %39 = vector.load %arg1[%c128, %c0_18] : memref<192x128xbf16, #tpu.memory_space<vmem>>, vector<64x128xbf16>
    %cst_19 = arith.constant dense<0.000000e+00> : vector<32x128xf32>
    %40 = tpu.matmul %38, %39, %cst_19 {dimension_numbers = #tpu.dot_dimension_numbers<[1], [0], [0], [1], [0, 0, 1, 1], [], []>} : vector<32x64xbf16>, vector<64x128xbf16>, vector<32x128xf32> -> vector<32x128xf32>
    %41 = arith.addf %37, %40 : vector<32x128xf32>
    %42 = vector.extract_strided_slice %0 {offsets = [0, 0], sizes = [1, 128], strides = [1, 1]} : vector<8x128xf32> to vector<1x128xf32>
    %43 = vector.broadcast %42 : vector<1x128xf32> to vector<32x128xf32>
    %44 = arith.addf %41, %43 : vector<32x128xf32>
    %45 = vector.extract_strided_slice %0 {offsets = [1, 0], sizes = [1, 128], strides = [1, 1]} : vector<8x128xf32> to vector<1x128xf32>
    %46 = vector.extract_strided_slice %0 {offsets = [2, 0], sizes = [1, 128], strides = [1, 1]} : vector<8x128xf32> to vector<1x128xf32>
    %cst_20 = arith.constant dense<0.000000e+00> : vector<128xf32>
    %47 = vector.multi_reduction <add>, %44, %cst_20 [0] : vector<32x128xf32> to vector<128xf32>
    %48 = vector.shape_cast %47 : vector<128xf32> to vector<1x128xf32>
    %49 = arith.mulf %44, %44 : vector<32x128xf32>
    %cst_21 = arith.constant dense<0.000000e+00> : vector<128xf32>
    %50 = vector.multi_reduction <add>, %49, %cst_21 [0] : vector<32x128xf32> to vector<128xf32>
    %51 = vector.shape_cast %50 : vector<128xf32> to vector<1x128xf32>
    %52 = tpu.concatenate %48, %51 in 0 : vector<1x128xf32>, vector<1x128xf32> -> vector<2x128xf32>
    %cst_22 = arith.constant dense<0.000000e+00> : vector<2x8xf32>
    %53 = tpu.matmul %52, %1, %cst_22 {dimension_numbers = #tpu.dot_dimension_numbers<[1], [0], [0], [1], [0, 0, 1, 1], [], []>} : vector<2x128xf32>, vector<128x8xf32>, vector<2x8xf32> -> vector<2x8xf32>
    %cst_23 = arith.constant dense<0.000000e+00> : vector<2x128xf32>
    %54 = tpu.matmul %53, %2, %cst_23 {dimension_numbers = #tpu.dot_dimension_numbers<[1], [0], [0], [1], [0, 0, 1, 1], [], []>} : vector<2x8xf32>, vector<8x128xf32>, vector<2x128xf32> -> vector<2x128xf32>
    %55 = vector.extract_strided_slice %54 {offsets = [0, 0], sizes = [1, 128], strides = [1, 1]} : vector<2x128xf32> to vector<1x128xf32>
    %cst_24 = arith.constant 0.001953125 : f32
    %56 = vector.broadcast %cst_24 : f32 to vector<1x128xf32>
    %57 = arith.mulf %55, %56 : vector<1x128xf32>
    %58 = vector.extract_strided_slice %54 {offsets = [1, 0], sizes = [1, 128], strides = [1, 1]} : vector<2x128xf32> to vector<1x128xf32>
    %cst_25 = arith.constant 0.001953125 : f32
    %59 = vector.broadcast %cst_25 : f32 to vector<1x128xf32>
    %60 = arith.mulf %58, %59 : vector<1x128xf32>
    %61 = arith.mulf %57, %57 : vector<1x128xf32>
    %62 = arith.subf %60, %61 : vector<1x128xf32>
    %cst_26 = arith.constant 9.99999974E-6 : f32
    %63 = vector.broadcast %cst_26 : f32 to vector<1x128xf32>
    %64 = arith.addf %62, %63 : vector<1x128xf32>
    %65 = math.rsqrt %64 : vector<1x128xf32>
    %66 = arith.mulf %45, %65 : vector<1x128xf32>
    %67 = arith.mulf %57, %66 : vector<1x128xf32>
    %68 = arith.subf %46, %67 : vector<1x128xf32>
    %69 = vector.broadcast %66 : vector<1x128xf32> to vector<32x128xf32>
    %70 = arith.mulf %44, %69 : vector<32x128xf32>
    %71 = vector.broadcast %68 : vector<1x128xf32> to vector<32x128xf32>
    %72 = arith.addf %70, %71 : vector<32x128xf32>
    %cst_27 = arith.constant 0.000000e+00 : f32
    %73 = vector.broadcast %cst_27 : f32 to vector<32x128xf32>
    %74 = arith.cmpf oge, %72, %73 : vector<32x128xf32>
    %cst_28 = arith.constant 0.00999999977 : f32
    %75 = vector.broadcast %cst_28 : f32 to vector<32x128xf32>
    %76 = arith.mulf %75, %72 : vector<32x128xf32>
    %77 = arith.select %74, %72, %76 : vector<32x128xi1>, vector<32x128xf32>
    %78 = tpu.iota {dimensions = array<i32: 0>} : vector<32x128xi32>
    %c16_i32_29 = arith.constant 16 : i32
    %c0_i32_30 = arith.constant 0 : i32
    %79 = arith.cmpi eq, %c16_i32_29, %c0_i32_30 : i32
    %c1_i32_31 = arith.constant 1 : i32
    %80 = arith.select %79, %c1_i32_31, %c16_i32_29 : i32
    %81 = vector.broadcast %80 : i32 to vector<32x128xi32>
    %82 = arith.remsi %78, %81 : vector<32x128xi32>
    %c0_i32_32 = arith.constant 0 : i32
    %83 = vector.broadcast %c0_i32_32 : i32 to vector<32x128xi32>
    %84 = arith.cmpi ne, %82, %83 : vector<32x128xi32>
    %c0_i32_33 = arith.constant 0 : i32
    %85 = vector.broadcast %c0_i32_33 : i32 to vector<32x128xi32>
    %86 = arith.cmpi slt, %82, %85 : vector<32x128xi32>
    %c0_i32_34 = arith.constant 0 : i32
    %87 = arith.cmpi slt, %80, %c0_i32_34 : i32
    %88 = vector.broadcast %87 : i1 to vector<32x128xi1>
    %89 = vector.broadcast %88 : vector<32x128xi1> to vector<32x128xi1>
    %90 = arith.xori %86, %89 : vector<32x128xi1>
    %91 = arith.andi %90, %84 : vector<32x128xi1>
    %92 = vector.broadcast %80 : i32 to vector<32x128xi32>
    %93 = arith.addi %82, %92 : vector<32x128xi32>
    %94 = arith.select %91, %93, %82 : vector<32x128xi1>, vector<32x128xi32>
    %c0_i32_35 = arith.constant 0 : i32
    %95 = vector.broadcast %c0_i32_35 : i32 to vector<32x128xi32>
    %96 = arith.cmpi ne, %94, %95 : vector<32x128xi32>
    %c1_i32_36 = arith.constant 1 : i32
    %97 = tpu.dynamic_rotate %77 by %c1_i32_36 dim 0 : vector<32x128xf32>, i32 -> vector<32x128xf32>
    %cst_37 = arith.constant 0.000000e+00 : f32
    %98 = vector.broadcast %cst_37 : f32 to vector<32x128xf32>
    %99 = arith.select %96, %97, %98 : vector<32x128xi1>, vector<32x128xf32>
    %c15_i32_38 = arith.constant 15 : i32
    %100 = vector.broadcast %c15_i32_38 : i32 to vector<32x128xi32>
    %101 = arith.cmpi ne, %94, %100 : vector<32x128xi32>
    %c31_i32_39 = arith.constant 31 : i32
    %102 = tpu.dynamic_rotate %77 by %c31_i32_39 dim 0 : vector<32x128xf32>, i32 -> vector<32x128xf32>
    %cst_40 = arith.constant 0.000000e+00 : f32
    %103 = vector.broadcast %cst_40 : f32 to vector<32x128xf32>
    %104 = arith.select %101, %102, %103 : vector<32x128xi1>, vector<32x128xf32>
    %105 = arith.truncf %99 : vector<32x128xf32> to vector<32x128xbf16>
    %c0_41 = arith.constant 0 : index
    %c0_42 = arith.constant 0 : index
    %106 = vector.load %arg2[%c0_41, %c0_42] : memref<384x128xbf16, #tpu.memory_space<vmem>>, vector<128x128xbf16>
    %cst_43 = arith.constant dense<0.000000e+00> : vector<32x128xf32>
    %107 = tpu.matmul %105, %106, %cst_43 {dimension_numbers = #tpu.dot_dimension_numbers<[1], [0], [0], [1], [0, 0, 1, 1], [], []>} : vector<32x128xbf16>, vector<128x128xbf16>, vector<32x128xf32> -> vector<32x128xf32>
    %108 = arith.truncf %77 : vector<32x128xf32> to vector<32x128xbf16>
    %c128_44 = arith.constant 128 : index
    %c0_45 = arith.constant 0 : index
    %109 = vector.load %arg2[%c128_44, %c0_45] : memref<384x128xbf16, #tpu.memory_space<vmem>>, vector<128x128xbf16>
    %cst_46 = arith.constant dense<0.000000e+00> : vector<32x128xf32>
    %110 = tpu.matmul %108, %109, %cst_46 {dimension_numbers = #tpu.dot_dimension_numbers<[1], [0], [0], [1], [0, 0, 1, 1], [], []>} : vector<32x128xbf16>, vector<128x128xbf16>, vector<32x128xf32> -> vector<32x128xf32>
    %111 = arith.addf %107, %110 : vector<32x128xf32>
    %112 = arith.truncf %104 : vector<32x128xf32> to vector<32x128xbf16>
    %c256 = arith.constant 256 : index
    %c0_47 = arith.constant 0 : index
    %113 = vector.load %arg2[%c256, %c0_47] : memref<384x128xbf16, #tpu.memory_space<vmem>>, vector<128x128xbf16>
    %cst_48 = arith.constant dense<0.000000e+00> : vector<32x128xf32>
    %114 = tpu.matmul %112, %113, %cst_48 {dimension_numbers = #tpu.dot_dimension_numbers<[1], [0], [0], [1], [0, 0, 1, 1], [], []>} : vector<32x128xbf16>, vector<128x128xbf16>, vector<32x128xf32> -> vector<32x128xf32>
    %115 = arith.addf %111, %114 : vector<32x128xf32>
    %116 = vector.extract_strided_slice %0 {offsets = [3, 0], sizes = [1, 128], strides = [1, 1]} : vector<8x128xf32> to vector<1x128xf32>
    %117 = vector.broadcast %116 : vector<1x128xf32> to vector<32x128xf32>
    %118 = arith.addf %117, %44 : vector<32x128xf32>
    %119 = arith.addf %115, %118 : vector<32x128xf32>
    %120 = vector.extract_strided_slice %0 {offsets = [4, 0], sizes = [1, 128], strides = [1, 1]} : vector<8x128xf32> to vector<1x128xf32>
    %121 = vector.extract_strided_slice %0 {offsets = [5, 0], sizes = [1, 128], strides = [1, 1]} : vector<8x128xf32> to vector<1x128xf32>
    %cst_49 = arith.constant dense<0.000000e+00> : vector<128xf32>
    %122 = vector.multi_reduction <add>, %119, %cst_49 [0] : vector<32x128xf32> to vector<128xf32>
    %123 = vector.shape_cast %122 : vector<128xf32> to vector<1x128xf32>
    %124 = arith.mulf %119, %119 : vector<32x128xf32>
    %cst_50 = arith.constant dense<0.000000e+00> : vector<128xf32>
    %125 = vector.multi_reduction <add>, %124, %cst_50 [0] : vector<32x128xf32> to vector<128xf32>
    %126 = vector.shape_cast %125 : vector<128xf32> to vector<1x128xf32>
    %127 = tpu.concatenate %123, %126 in 0 : vector<1x128xf32>, vector<1x128xf32> -> vector<2x128xf32>
    %cst_51 = arith.constant dense<0.000000e+00> : vector<2x8xf32>
    %128 = tpu.matmul %127, %1, %cst_51 {dimension_numbers = #tpu.dot_dimension_numbers<[1], [0], [0], [1], [0, 0, 1, 1], [], []>} : vector<2x128xf32>, vector<128x8xf32>, vector<2x8xf32> -> vector<2x8xf32>
    %cst_52 = arith.constant dense<0.000000e+00> : vector<2x128xf32>
    %129 = tpu.matmul %128, %2, %cst_52 {dimension_numbers = #tpu.dot_dimension_numbers<[1], [0], [0], [1], [0, 0, 1, 1], [], []>} : vector<2x8xf32>, vector<8x128xf32>, vector<2x128xf32> -> vector<2x128xf32>
    %130 = vector.extract_strided_slice %129 {offsets = [0, 0], sizes = [1, 128], strides = [1, 1]} : vector<2x128xf32> to vector<1x128xf32>
    %cst_53 = arith.constant 0.001953125 : f32
    %131 = vector.broadcast %cst_53 : f32 to vector<1x128xf32>
    %132 = arith.mulf %130, %131 : vector<1x128xf32>
    %133 = vector.extract_strided_slice %129 {offsets = [1, 0], sizes = [1, 128], strides = [1, 1]} : vector<2x128xf32> to vector<1x128xf32>
    %cst_54 = arith.constant 0.001953125 : f32
    %134 = vector.broadcast %cst_54 : f32 to vector<1x128xf32>
    %135 = arith.mulf %133, %134 : vector<1x128xf32>
    %136 = arith.mulf %132, %132 : vector<1x128xf32>
    %137 = arith.subf %135, %136 : vector<1x128xf32>
    %cst_55 = arith.constant 9.99999974E-6 : f32
    %138 = vector.broadcast %cst_55 : f32 to vector<1x128xf32>
    %139 = arith.addf %137, %138 : vector<1x128xf32>
    %140 = math.rsqrt %139 : vector<1x128xf32>
    %141 = arith.mulf %120, %140 : vector<1x128xf32>
    %142 = arith.mulf %132, %141 : vector<1x128xf32>
    %143 = arith.subf %121, %142 : vector<1x128xf32>
    %144 = vector.broadcast %141 : vector<1x128xf32> to vector<32x128xf32>
    %145 = arith.mulf %119, %144 : vector<32x128xf32>
    %146 = vector.broadcast %143 : vector<1x128xf32> to vector<32x128xf32>
    %147 = arith.addf %145, %146 : vector<32x128xf32>
    %cst_56 = arith.constant 0.000000e+00 : f32
    %148 = vector.broadcast %cst_56 : f32 to vector<32x128xf32>
    %149 = arith.cmpf oge, %147, %148 : vector<32x128xf32>
    %cst_57 = arith.constant 0.00999999977 : f32
    %150 = vector.broadcast %cst_57 : f32 to vector<32x128xf32>
    %151 = arith.mulf %150, %147 : vector<32x128xf32>
    %152 = arith.select %149, %147, %151 : vector<32x128xi1>, vector<32x128xf32>
    %c0_58 = arith.constant 0 : index
    %c0_59 = arith.constant 0 : index
    %153 = vector.load %arg6[%c0_58, %c0_59] : memref<32x128xf32, #tpu.memory_space<vmem>>, vector<32x128xf32>
    tpu.vector_store %arg6[%c0_58, %c0_59], %152 {strides = array<i32>} : memref<32x128xf32, #tpu.memory_space<vmem>>, vector<32x128xf32>,
    return
  }
}

</mosaic_0001>

<bundles_post_ra>
// kernel: conv_block1_apply.1
= control target key start
LH: loop header
LB: loop body
LE: loop exit
PB: predicated region body
PF: predicated region fallthrough
CT: control target
= control target key end

     0   :  { %v46_v0 = vlaneseq  ;;  %vm177_vm0 = vcmask 523264   ;;  %v1659_v58 = vmov 0.0|0.0   ;;  %vm1660_vm7 = vmmov 0   ;;  %s2087_s1 = inlined_call_operand.vmem [shape: bf16[192,128], index: 1, kind: input, shape index: {}]   ;;  %s2088_s0 = inlined_call_operand.vmem [shape: f32[32,64], index: 0, kind: input, shape index: {}]   ;;  %s2089_s4 = inlined_call_operand.vmem [shape: f32[128,8], index: 4, kind: input, shape index: {}]   ;;  %s2090_s3 = inlined_call_operand.vmem [shape: f32[8,128], index: 3, kind: input, shape index: {}]   ;;  %s2091_s5 = inlined_call_operand.vmem [shape: f32[8,128], index: 5, kind: input, shape index: {}]   ;;  %s2092_s2 = inlined_call_operand.vmem [shape: bf16[384,128], index: 2, kind: input, shape index: {}]   ;;  %s2093_s6 = inlined_call_operand.vmem [shape: f32[32,128], index: 6, kind: output, shape index: {}]  }
   0x1   :  { %v1619_v1 = vld [vmem:[%s2087_s1 + $0x20] sm:$0xff]   ;;  %v1620_v2 = vld [vmem:[%s2087_s1 + $0x28] sm:$0xff]   ;;  %v1621_v4 = vld [vmem:[%s2087_s1 + $0x30] sm:$0xff]   ;;  %vm435_vm8 = vcmask 1040384   ;;  %vm507_vm9 = vcmask 64512   ;;  %vm1662_vm14 = vmmov 1  }
   0x2   :  { %v1704_v3 = vshrl.u32 %v46_v0, 7  ;;  %1375 = vmatprep.subr.bf16.mxu0 %v1619_v1  ;;  %v1712_v5 = vld [vmem:[%s2088_s0] sm:$0xff]  ;;  %v43_v6 = vld [vmem:[%s2088_s0 + $0x8] sm:$0xff]  ;;  %v1723_v10 = vld [vmem:[%s2088_s0 + $0x18] sm:$0xff] }
   0x3   :  { %1376 = vmatpush3.bf16.msra.mxu0 %v1619_v1  ;;  %v103_v7 = vrot.slane %v1712_v5, 7  ;;  %v143_v9 = vpack.c.bf16 %v43_v6, %v1712_v5  ;;  %v106_v11 = vrot.slane %v1723_v10, 7  ;;  %v1622_v12 = vld [vmem:[%s2087_s1 + $0x38] sm:$0xff]   ;;  %v104_v13 = vrot.slane %v43_v6, 7  ;;  %v44_v16 = vld [vmem:[%s2088_s0 + $0x10] sm:$0xff]  ;;  %v1623_v17 = vld [vmem:[%s2087_s1] sm:$0xff]  }
   0x4   :  { %1377 = vmatprep.subr.bf16.mxu0 %v1620_v2  ;;  %v55_v8 = vand.u32 15, %v1704_v3  ;;  %vm107_vm1 = vcmp.lt.s32.totalorder %v1704_v3, 1  ;;  %v144_v20 = vpack.c.bf16 %v1723_v10, %v44_v16  ;;  %v1624_v22 = vld [vmem:[%s2087_s1 + $0x8] sm:$0xff]   ;;  %v49_v23 = vadd.s32 16, %v1704_v3  ;;  %v1625_v26 = vld [vmem:[%s2087_s1 + $0x10] sm:$0xff]   ;;  %v1626_v32 = vld [vmem:[%s2087_s1 + $0x18] sm:$0xff]  }
   0x5   :  { %1383 = vmatprep.mubr.msk.bf16.mxu0 %vm177_vm0, %v143_v9  ;;  %v111_v15 = vsel %vm107_vm1, %v106_v11, %v103_v7  ;;  %v110_v18 = vsel %vm107_vm1, %v103_v7, %v104_v13  ;;  %v48_v24 = vadd.s32 8, %v1704_v3  ;;  %v105_v25 = vrot.slane %v44_v16, 7  ;;  %v1627_v39 = vld [vmem:[%s2087_s1 + $0x40] sm:$0xff]   ;;  %v1628_v44 = vld [vmem:[%s2087_s1 + $0x48] sm:$0xff]   ;;  %v1629_v47 = vld [vmem:[%s2087_s1 + $0x50] sm:$0xff]  }
   0x6   :  { %vm1731_vm2 = vcmp.ne.s32.totalorder %v55_v8, 0  ;;  %v69_v27 = vand.u32 15, %v49_v23  ;;  %v121_v28 = vrot.slane %v43_v6, 1  ;;  %v122_v29 = vrot.slane %v44_v16, 1  ;;  %v1630_v49 = vld [vmem:[%s2087_s1 + $0x58] sm:$0xff]   ;;  %v25_v54 = vld [vmem:[%s2089_s4] sm:$0xff] }
   0x7   :  { %1378 = vmatpush3.bf16.msra.mxu0 %v1620_v2  ;;  %v112_v19 = vsel %vm1731_vm2, %v111_v15, 0.0  ;;  %v62_v30 = vand.u32 15, %v48_v24  ;;  %vm124_vm3 = vcmp.lt.s32.totalorder %v1704_v3, 7  ;;  %v120_v31 = vrot.slane %v1712_v5, 1  ;;  %v26_v55 = vld [vmem:[%s2089_s4 + $0x8] sm:$0xff]  ;;  %v27_v59 = vld [vmem:[%s2089_s4 + $0x10] sm:$0xff]  ;;  %vm1268_vm15 = vmpackc.low %vm1662_vm14, %vm1731_vm2 }
   0x8   :  { %1379 = vmatprep.subr.bf16.mxu0 %v1621_v4  ;;  %v133_v21 = vpack.c.bf16 %v110_v18, %v112_v19  ;;  %vm1763_vm4 = vcmp.ne.s32.totalorder %v69_v27, 0  ;;  %v109_v34 = vsel %vm107_vm1, %v104_v13, %v105_v25  ;;  %v126_v36 = vsel %vm124_vm3, %v121_v28, %v122_v29  ;;  %v28_v60 = vld [vmem:[%s2089_s4 + $0x18] sm:$0xff]  ;;  %v29_v62 = vld [vmem:[%s2089_s4 + $0x20] sm:$0xff]  ;;  %v30_v63 = vld [vmem:[%s2089_s4 + $0x28] sm:$0xff] }
   0x9   :  { %vm1769_vm5 = vcmp.ne.s32.totalorder %v62_v30, 15  ;;  %v108_v37 = vsel %vm107_vm1, %v105_v25, %v106_v11  ;;  %v114_v38 = vsel %vm1763_vm4, %v109_v34, 0.0  ;;  %v127_v40 = vsel %vm124_vm3, %v120_v31, %v121_v28  ;;  %v31_v1 = vld [vmem:[%s2089_s4 + $0x30] sm:$0xff]  ;;  %v32_v2 = vld [vmem:[%s2089_s4 + $0x38] sm:$0xff]  ;;  %v33_v5 = vld [vmem:[%s2089_s4 + $0x40] sm:$0xff] }
   0xa   :  { %v130_v41 = vsel %vm1769_vm5, %v126_v36, 0.0  ;;  %v134_v42 = vpack.c.bf16 %v108_v37, %v114_v38  ;;  %v50_v45 = vadd.s32 24, %v1704_v3  ;;  %v123_v46 = vrot.slane %v1723_v10, 1  ;;  %v34_v6 = vld [vmem:[%s2089_s4 + $0x48] sm:$0xff]  ;;  %v35_v8 = vld [vmem:[%s2089_s4 + $0x50] sm:$0xff]  ;;  %v36_v9 = vld [vmem:[%s2089_s4 + $0x58] sm:$0xff] }
   0xb   :  { %1380 = vmatpush3.bf16.msra.mxu0 %v1621_v4  ;;  %v312_v43 = vpack.c.bf16 %v130_v41, %v127_v40  ;;  %v1815_v57 = vpack.c.bf16 %v26_v55, %v25_v54  ;;  %v1827_v61 = vpack.c.bf16 %v28_v60, %v27_v59  ;;  %v1837_v0 = vpack.c.bf16 %v30_v63, %v29_v62  ;;  %v38_v13 = vld [vmem:[%s2089_s4 + $0x68] sm:$0xff]  ;;  %v39_v16 = vld [vmem:[%s2089_s4 + $0x70] sm:$0xff]  ;;  %v1631_v60 = vld [vmem:[%s2092_s2 + $0x40] sm:$0xff]  }
   0xc   :  { %1381 = vmatprep.subr.bf16.mxu0 %v1622_v12  ;;  %v76_v48 = vand.u32 15, %v50_v45  ;;  %v128_v51 = vsel %vm124_vm3, %v123_v46, %v120_v31  ;;  %v125_v52 = vsel %vm124_vm3, %v122_v29, %v123_v46  ;;  %v1847_v4 = vpack.c.bf16 %v32_v2, %v31_v1  ;;  %v1634_v62 = vld [vmem:[%s2092_s2 + $0x58] sm:$0xff]   ;;  %v1635_v63 = vld [vmem:[%s2092_s2 + $0x60] sm:$0xff]   ;;  %v1637_v1 = vld [vmem:[%s2092_s2 + $0x70] sm:$0xff]  }
   0xd   :  { %v1857_v7 = vpack.c.bf16 %v34_v6, %v33_v5  ;;  %v1661_v10 = vmov 0.0   ;;  %v1567_v11 = vpack.c.bf16 %v36_v9, %v35_v8  ;;  %v407_v19 = vsub.s32 0, %v1704_v3  ;;  %v1638_v2 = vld [vmem:[%s2092_s2 + $0x78] sm:$0xff]   ;;  %v1643_v14 = vld [vmem:[%s2092_s2 + $0x20] sm:$0xff]   ;;  %vm1282_vm2 = vmpackc.low %vm1769_vm5, %vm1662_vm14 }
   0xe   :  { %vm1799_vm6 = vcmp.ne.s32.totalorder %v76_v48, 15  ;;  %1446 = vmatprep.subr.mxu1 %v1661_v10  ;;  %1448 = vmatprep.mubr.msk.f32.mxu1 %vm1660_vm7, %v1661_v10  ;;  %v1649_v33 = vld [vmem:[%s2092_s2 + $0x90] sm:$0xff]   ;;  %v1650_v35 = vld [vmem:[%s2092_s2 + $0x98] sm:$0xff]  }
   0xf   :  { %1382 = vmatpush3.bf16.msra.mxu0 %v1622_v12  ;;  %v132_v53 = vsel %vm1799_vm6, %v128_v51, 0.0  ;;  %v37_v12 = vld [vmem:[%s2089_s4 + $0x60] sm:$0xff] }
  0x10   :  { %1387 = vmatprep.subr.bf16.mxu0 %v1623_v17  ;;  %v313_v56 = vpack.c.bf16 %v132_v53, %v125_v52  ;;  %v1570_v15 = vpack.c.bf16 %v38_v13, %v37_v12 }
  0x12   :  { %1384 = vmatmul.mubr.msk.bf16.vlgmr.msra.gmra.mrb[0].mxu0 %vm177_vm0, %v144_v20  ;;  %v1891_v20 = vld [vmem:[%s2090_s3] sm:$0xff] }
  0x13   :  { %1388 = vmatpush3.bf16.msra.mxu0 %v1623_v17  ;;  %1395 = vmatprep.mubr.msk.bf16.mxu0 %vm177_vm0, %v133_v21  ;;  %v40_v17 = vld [vmem:[%s2089_s4 + $0x78] sm:$0xff]  ;;  %v408_v21 = vrot.slane %v1891_v20, %v407_v19 }
  0x14   :  { %1389 = vmatprep.subr.bf16.mxu0 %v1624_v22  ;;  %v1573_v18 = vpack.c.bf16 %v40_v17, %v39_v16  ;;  %v600_v16 = vsub.s32 1, %v1704_v3 }
  0x17   :  { %1390 = vmatpush3.bf16.msra.mxu0 %v1624_v22 }
  0x18   :  { %1391 = vmatprep.subr.bf16.mxu0 %v1625_v26 }
  0x1b   :  { %1392 = vmatpush3.bf16.msra.mxu0 %v1625_v26 }
  0x1c   :  { %1393 = vmatprep.subr.bf16.mxu0 %v1626_v32 }
  0x1f   :  { %1394 = vmatpush3.bf16.msra.mxu0 %v1626_v32 }
  0x20   :  { %1399 = vmatprep.subr.bf16.mxu0 %v1627_v39 }
  0x22   :  { %1396 = vmatmul.mubr.msk.bf16.vlgmr.msra.gmra.mrb[0].mxu0 %vm177_vm0, %v134_v42 }
  0x23   :  { %1400 = vmatpush3.bf16.msra.mxu0 %v1627_v39  ;;  %1407 = vmatprep.mubr.msk.bf16.mxu0 %vm177_vm0, %v312_v43 }
  0x24   :  { %1401 = vmatprep.subr.bf16.mxu0 %v1628_v44 }
  0x27   :  { %1402 = vmatpush3.bf16.msra.mxu0 %v1628_v44 }
  0x28   :  { %1403 = vmatprep.subr.bf16.mxu0 %v1629_v47 }
  0x2b   :  { %1404 = vmatpush3.bf16.msra.mxu0 %v1629_v47 }
  0x2c   :  { %1405 = vmatprep.subr.bf16.mxu0 %v1630_v49 }
  0x2f   :  { %1406 = vmatpush3.bf16.msra.mxu0 %v1630_v49 }
  0x30   :  { %1551 = vmatprep.subr.bf16.mxu0 %v1659_v58 }
  0x32   :  { %1408 = vmatmul.mubr.msk.bf16.vlgmr.msra.gmra.mrb[0].mxu0 %vm177_vm0, %v313_v56  ;;  %v1932_v56 = vld [vmem:[%s2091_s5] sm:$0xff]  ;;  %vm1271_vm0 = vmpackc.low %vm1662_vm14, %vm1763_vm4 }
  0x33   :  { %1553 = vmatpush3.bf16.msra.mxu0 %v1815_v57  ;;  %1443 = vmatprep.mubr.msk.f32.mxu0 %vm1660_vm7, %v1661_v10 }
  0x34   :  { %1554 = vmatprep.subr.bf16.mxu0 %v1659_v58  ;;  %1447 = vmatpush3.msra.mxu1 %v1932_v56 }
  0x35   :  { %1451 = vmatprep.subr.bf16.mxu1 %v1631_v60 }
  0x37   :  { %1556 = vmatpush3.bf16.msra.mxu0 %v1827_v61 }
  0x38   :  { %1557 = vmatprep.subr.bf16.mxu0 %v1659_v58 }
  0x3b   :  { %1559 = vmatpush3.bf16.msra.mxu0 %v1837_v0 }
  0x3c   :  { %1560 = vmatprep.subr.bf16.mxu0 %v1659_v58 }
  0x3f   :  { %1562 = vmatpush3.bf16.msra.mxu0 %v1847_v4 }
  0x40   :  { %1563 = vmatprep.subr.bf16.mxu0 %v1659_v58 }
  0x43   :  { %1565 = vmatpush3.bf16.msra.mxu0 %v1857_v7 }
  0x44   :  { %1566 = vmatprep.subr.bf16.mxu0 %v1659_v58 }
  0x47   :  { %1568 = vmatpush3.bf16.msra.mxu0 %v1567_v11 }
  0x48   :  { %1569 = vmatprep.subr.bf16.mxu0 %v1659_v58 }
  0x4b   :  { %1571 = vmatpush3.bf16.msra.mxu0 %v1570_v15 }
  0x4c   :  { %1572 = vmatprep.subr.bf16.mxu0 %v1659_v58 }
  0x4f   :  { %1574 = vmatpush3.bf16.msra.mxu0 %v1573_v18 }
  0x50   :  { %1575 = vmatprep.subr.bf16.mxu0 %v1659_v58 }
 0x105   :  { %v1409_v22 = vpop.f32.mrb[0].mxu0 }
 0x106   :  { %v386_v23 = vpop.f32.mrb[1].mxu0  ;;  %v1896_v27 = vadd.f32 %v1409_v22, %v408_v21  ;;  %v608_v22 = vsub.s32 2, %v1704_v3 }
 0x107   :  { %v1894_v24 = vadd.f32 %v408_v21, %v386_v23  ;;  %v1410_v25 = vpop.f32.mrb[2].mxu0 }
 0x108   :  { %v389_v26 = vpop.f32.mrb[3].mxu0  ;;  %v1902_v30 = vadd.f32 %v1410_v25, %v408_v21  ;;  %v424_v34 = vmul.f32 %v1896_v27, %v1896_v27 }
 0x109   :  { %v1898_v28 = vadd.f32 %v408_v21, %v389_v26  ;;  %v422_v29 = vmul.f32 %v1894_v24, %v1894_v24 }
 0x10a   :  { %v425_v38 = vmul.f32 %v1902_v30, %v1902_v30 }
 0x10b   :  { %v413_v31 = vadd.f32 %v1898_v28, %v1894_v24  ;;  %v423_v32 = vmul.f32 %v1898_v28, %v1898_v28 }
 0x10d   :  { %v414_v36 = vadd.f32 %v413_v31, %v1896_v27  ;;  %v426_v37 = vadd.f32 %v423_v32, %v422_v29 }
 0x10f   :  { %v415_v39 = vadd.f32 %v414_v36, %v1902_v30  ;;  %v427_v40 = vadd.f32 %v426_v37, %v424_v34 }
 0x111   :  { %v416_v41 = vrot.slane %v415_v39, 4  ;;  %v428_v42 = vadd.f32 %v427_v40, %v425_v38 }
 0x113   :  { %v417_v43 = vadd.f32 %v416_v41, %v415_v39  ;;  %v429_v44 = vrot.slane %v428_v42, 4 }
 0x115   :  { %v418_v45 = vrot.slane %v417_v43, 2  ;;  %v430_v46 = vadd.f32 %v429_v44, %v428_v42 }
 0x117   :  { %v419_v47 = vadd.f32 %v418_v45, %v417_v43  ;;  %v431_v48 = vrot.slane %v430_v46, 2 }
 0x119   :  { %v420_v49 = vrot.slane %v419_v47, 1  ;;  %v432_v51 = vadd.f32 %v431_v48, %v430_v46 }
 0x11b   :  { %v433_v52 = vrot.slane %v432_v51, 1  ;;  %v421_v53 = vadd.f32 %v420_v49, %v419_v47 }
 0x11d   :  { %v434_v54 = vadd.f32 %v433_v52, %v432_v51 }
 0x11f   :  { %v436_v55 = vsel %vm435_vm8, %v421_v53, %v434_v54  ;;  %v1640_v54 = vld [vmem:[%s2092_s2 + $0x8] sm:$0xff]  }
 0x120   :  { %1444 = vmatmul.mubr.f32.vlgmr.msra.gmra.mrb[4].mxu0 %v436_v55 }
 0x121   :  { %1577 = vmatpush3.bf16.msra.mxu0 %v1815_v57  ;;  %1543 = vmatprep.mubr.msk.f32.mxu0 %vm1660_vm7, %v1661_v10 }
 0x122   :  { %1578 = vmatprep.subr.bf16.mxu0 %v1659_v58 }
 0x125   :  { %1580 = vmatpush3.bf16.msra.mxu0 %v1827_v61  ;;  %v1633_v61 = vld [vmem:[%s2092_s2 + $0x50] sm:$0xff]  }
 0x126   :  { %1581 = vmatprep.subr.bf16.mxu0 %v1659_v58 }
 0x129   :  { %1583 = vmatpush3.bf16.msra.mxu0 %v1837_v0  ;;  %v1636_v0 = vld [vmem:[%s2092_s2 + $0x68] sm:$0xff]  }
 0x12a   :  { %1584 = vmatprep.subr.bf16.mxu0 %v1659_v58 }
 0x12d   :  { %1586 = vmatpush3.bf16.msra.mxu0 %v1847_v4  ;;  %v1639_v4 = vld [vmem:[%s2092_s2] sm:$0xff]  }
 0x12e   :  { %1587 = vmatprep.subr.bf16.mxu0 %v1659_v58 }
 0x131   :  { %1589 = vmatpush3.bf16.msra.mxu0 %v1857_v7 }
 0x132   :  { %1590 = vmatprep.subr.bf16.mxu0 %v1659_v58 }
 0x135   :  { %1592 = vmatpush3.bf16.msra.mxu0 %v1567_v11 }
 0x136   :  { %1593 = vmatprep.subr.bf16.mxu0 %v1659_v58 }
 0x139   :  { %1595 = vmatpush3.bf16.msra.mxu0 %v1570_v15 }
 0x13a   :  { %1596 = vmatprep.subr.bf16.mxu0 %v1659_v58  ;;  %v1632_v58 = vld [vmem:[%s2092_s2 + $0x48] sm:$0xff]  }
 0x13d   :  { %1598 = vmatpush3.bf16.msra.mxu0 %v1573_v18 }
 0x1f3   :  { %v503_v57 = vpop.f32.mrb[4].mxu0 }
 0x1f4   :  { %v1445_v59 = vpop.f32.mrb[5].mxu0  ;;  %1449 = vmatmul.mubr.msk.f32.vlgmr.msra.gmra.mrb[0].mxu1 %vm507_vm9, %v503_v57 }
 0x1f5   :  { %1452 = vmatpush3.bf16.msra.mxu1 %v1631_v60  ;;  %v1641_v59 = vld [vmem:[%s2092_s2 + $0x10] sm:$0xff]   ;;  %v1642_v60 = vld [vmem:[%s2092_s2 + $0x18] sm:$0xff]  }
 0x1f6   :  { %1453 = vmatprep.subr.bf16.mxu1 %v1632_v58 }
 0x1f9   :  { %1454 = vmatpush3.bf16.msra.mxu1 %v1632_v58  ;;  %v1644_v58 = vld [vmem:[%s2092_s2 + $0x28] sm:$0xff]  }
 0x1fa   :  { %1455 = vmatprep.subr.bf16.mxu1 %v1633_v61 }
 0x1fd   :  { %1456 = vmatpush3.bf16.msra.mxu1 %v1633_v61  ;;  %v1645_v61 = vld [vmem:[%s2092_s2 + $0x30] sm:$0xff]  }
 0x1fe   :  { %1457 = vmatprep.subr.bf16.mxu1 %v1634_v62 }
 0x201   :  { %1458 = vmatpush3.bf16.msra.mxu1 %v1634_v62  ;;  %v1646_v62 = vld [vmem:[%s2092_s2 + $0x38] sm:$0xff]  }
 0x202   :  { %1459 = vmatprep.subr.bf16.mxu1 %v1635_v63 }
 0x205   :  { %1460 = vmatpush3.bf16.msra.mxu1 %v1635_v63 }
 0x206   :  { %1461 = vmatprep.subr.bf16.mxu1 %v1636_v0 }
 0x209   :  { %1462 = vmatpush3.bf16.msra.mxu1 %v1636_v0 }
 0x20a   :  { %1463 = vmatprep.subr.bf16.mxu1 %v1637_v1 }
 0x20d   :  { %1464 = vmatpush3.bf16.msra.mxu1 %v1637_v1 }
 0x20e   :  { %1465 = vmatprep.subr.bf16.mxu1 %v1638_v2 }
 0x211   :  { %1466 = vmatpush3.bf16.msra.mxu1 %v1638_v2 }
 0x212   :  { %1471 = vmatprep.subr.bf16.mxu1 %v1639_v4 }
 0x2c7   :  { %v577_v5 = vpop.f32.mrb[0].mxu1 }
 0x2c8   :  { %v581_v6 = vmul.f32 0.001953125, %v577_v5  ;;  %v1450_v7 = vpop.f32.mrb[1].mxu1 }
 0x2ca   :  { %v582_v8 = vmul.f32 %v581_v6, %v581_v6 }
 0x2cc   :  { %v584_v9 = vrot.slane %v582_v8, 7 }
 0x2ce   :  { %v586_v11 = vsub.f32 %v581_v6, %v584_v9 }
 0x2d0   :  { %v587_v12 = vadd.f32 1e-05, %v586_v11  ;;  %v1648_v11 = vld [vmem:[%s2092_s2 + $0x88] sm:$0xff]  }
 0x2d2   :  { %1655 = vrsqrt.f32 %v587_v12 }
 0x2dc   :  { %v1656_v13 = vpop.eup %1655 }
 0x2dd   :  { %v589_v15 = vmul.f32 %v1656_v13, %v1891_v20  ;;  %v1651_v13 = vld [vmem:[%s2092_s2 + $0xa0] sm:$0xff]  }
 0x2df   :  { %v591_v17 = vrot.slane %v589_v15, 1  ;;  %v601_v19 = vrot.slane %v589_v15, %v600_v16  ;;  %v1652_v15 = vld [vmem:[%s2092_s2 + $0xa8] sm:$0xff]   ;;  %v1653_v16 = vld [vmem:[%s2092_s2 + $0xb0] sm:$0xff]  }
 0x2e1   :  { %v593_v18 = vmul.f32 %v591_v17, %v581_v6  ;;  %v602_v25 = vmul.f32 %v601_v19, %v1894_v24  ;;  %v603_v29 = vmul.f32 %v601_v19, %v1898_v28  ;;  %v604_v31 = vmul.f32 %v601_v19, %v1896_v27  ;;  %v1654_v17 = vld [vmem:[%s2092_s2 + $0xb8] sm:$0xff]  }
 0x2e2   :  { %v605_v32 = vmul.f32 %v601_v19, %v1902_v30 }
 0x2e3   :  { %v595_v21 = vrot.slane %v593_v18, 6 }
 0x2e5   :  { %v597_v23 = vsub.f32 %v1891_v20, %v595_v21 }
 0x2e7   :  { %v609_v26 = vrot.slane %v597_v23, %v608_v22  ;;  %v1001_v23 = vsub.s32 3, %v1704_v3 }
 0x2e9   :  { %v610_v34 = vadd.f32 %v609_v26, %v602_v25  ;;  %v611_v36 = vadd.f32 %v609_v26, %v603_v29  ;;  %v612_v37 = vadd.f32 %v609_v26, %v604_v31  ;;  %v613_v38 = vadd.f32 %v609_v26, %v605_v32 }
 0x2ea   :  { %v1002_v25 = vrot.slane %v1891_v20, %v1001_v23 }
 0x2eb   :  { %vm614_vm10 = vcmp.ge.f32.partialorder %v610_v34, 0.0  ;;  %vm615_vm11 = vcmp.ge.f32.partialorder %v611_v36, 0.0  ;;  %v618_v39 = vmul.f32 0.01, %v610_v34  ;;  %v619_v40 = vmul.f32 0.01, %v611_v36 }
 0x2ec   :  { %vm616_vm12 = vcmp.ge.f32.partialorder %v612_v37, 0.0  ;;  %vm617_vm13 = vcmp.ge.f32.partialorder %v613_v38, 0.0  ;;  %v620_v41 = vmul.f32 0.01, %v612_v37  ;;  %v621_v42 = vmul.f32 0.01, %v613_v38 }
 0x2ed   :  { %v1971_v43 = vsel %vm614_vm10, %v610_v34, %v618_v39  ;;  %v623_v44 = vsel %vm615_vm11, %v611_v36, %v619_v40  ;;  %v1003_v29 = vadd.f32 %v1002_v25, %v1894_v24  ;;  %v1005_v50 = vadd.f32 %v1002_v25, %v1896_v27 }
 0x2ee   :  { %v626_v45 = vrot.slane %v1971_v43, 7  ;;  %v627_v46 = vrot.slane %v623_v44, 7  ;;  %v668_v47 = vpack.c.bf16 %v623_v44, %v1971_v43  ;;  %v1975_v48 = vsel %vm616_vm12, %v612_v37, %v620_v41 }
 0x2ef   :  { %v1977_v49 = vsel %vm617_vm13, %v613_v38, %v621_v42  ;;  %v628_v63 = vrot.slane %v1975_v48, 7  ;;  %v638_v0 = vrot.slane %v1971_v43, 1  ;;  %v639_v1 = vrot.slane %v623_v44, 1 }
 0x2f0   :  { %v629_v51 = vrot.slane %v1977_v49, 7  ;;  %1467 = vmatprep.mubr.bf16.mxu1 %v668_v47  ;;  %v669_v52 = vpack.c.bf16 %v1977_v49, %v1975_v48  ;;  %v632_v53 = vsel %vm107_vm1, %v626_v45, %v627_v46  ;;  %v640_v2 = vrot.slane %v1975_v48, 1 }
 0x2f1   :  { %v631_v6 = vsel %vm107_vm1, %v627_v46, %v628_v63  ;;  %v644_v8 = vsel %vm124_vm3, %v638_v0, %v639_v1  ;;  %v641_v18 = vrot.slane %v1977_v49, 1  ;;  %v1004_v36 = vadd.f32 %v1002_v25, %v1898_v28 }
 0x2f2   :  { %v633_v55 = vsel %vm107_vm1, %v629_v51, %v626_v45  ;;  %1468 = vmatmul.mubr.bf16.vlgmr.msra.gmra.mrb[4].mxu1 %v669_v52  ;;  %v630_v5 = vsel %vm107_vm1, %v628_v63, %v629_v51  ;;  %v643_v7 = vsel %vm124_vm3, %v639_v1, %v640_v2  ;;  %vm1285_vm1 = vmpackc.low %vm1799_vm6, %vm1662_vm14 }
 0x2f3   :  { %v1269_v57 = vpack.c.bf16 %v632_v53, %v633_v55  ;;  %1472 = vmatpush3.bf16.msra.mxu1 %v1639_v4  ;;  %v1647_v4 = vld [vmem:[%s2092_s2 + $0x80] sm:$0xff]   ;;  %v1272_v9 = vpack.c.bf16 %v630_v5, %v631_v6  ;;  %v1283_v12 = vpack.c.bf16 %v643_v7, %v644_v8  ;;  %v642_v19 = vsel %vm124_vm3, %v640_v2, %v641_v18 }
 0x2f4   :  { %1473 = vmatprep.subr.bf16.mxu1 %v1640_v54  ;;  %v645_v21 = vsel %vm124_vm3, %v641_v18, %v638_v0 }
 0x2f5   :  { %1487 = vmatprep.mubr.msk.bf16.mxu1 %vm1268_vm15, %v1269_v57  ;;  %v1286_v22 = vpack.c.bf16 %v645_v21, %v642_v19 }
 0x2f7   :  { %1474 = vmatpush3.bf16.msra.mxu1 %v1640_v54 }
 0x2f8   :  { %1475 = vmatprep.subr.bf16.mxu1 %v1641_v59 }
 0x2fb   :  { %1476 = vmatpush3.bf16.msra.mxu1 %v1641_v59 }
 0x2fc   :  { %1477 = vmatprep.subr.bf16.mxu1 %v1642_v60 }
 0x2ff   :  { %1478 = vmatpush3.bf16.msra.mxu1 %v1642_v60 }
 0x300   :  { %1479 = vmatprep.subr.bf16.mxu1 %v1643_v14 }
 0x303   :  { %1480 = vmatpush3.bf16.msra.mxu1 %v1643_v14 }
 0x304   :  { %1481 = vmatprep.subr.bf16.mxu1 %v1644_v58 }
 0x307   :  { %1482 = vmatpush3.bf16.msra.mxu1 %v1644_v58 }
 0x308   :  { %1483 = vmatprep.subr.bf16.mxu1 %v1645_v61 }
 0x30b   :  { %1484 = vmatpush3.bf16.msra.mxu1 %v1645_v61 }
 0x30c   :  { %1485 = vmatprep.subr.bf16.mxu1 %v1646_v62 }
 0x30f   :  { %1486 = vmatpush3.bf16.msra.mxu1 %v1646_v62 }
 0x310   :  { %1491 = vmatprep.subr.bf16.mxu1 %v1647_v4 }
 0x312   :  { %1488 = vmatmul.mubr.msk.bf16.vlgmr.msra.gmra.mrb[4].mxu1 %vm1271_vm0, %v1272_v9  ;;  %v1199_v9 = vsub.s32 4, %v1704_v3 }
 0x313   :  { %1492 = vmatpush3.bf16.msra.mxu1 %v1647_v4  ;;  %1507 = vmatprep.mubr.msk.bf16.mxu1 %vm1282_vm2, %v1283_v12 }
 0x314   :  { %1493 = vmatprep.subr.bf16.mxu1 %v1648_v11 }
 0x317   :  { %1494 = vmatpush3.bf16.msra.mxu1 %v1648_v11 }
 0x318   :  { %1495 = vmatprep.subr.bf16.mxu1 %v1649_v33 }
 0x31b   :  { %1496 = vmatpush3.bf16.msra.mxu1 %v1649_v33 }
 0x31c   :  { %1497 = vmatprep.subr.bf16.mxu1 %v1650_v35 }
 0x31f   :  { %1498 = vmatpush3.bf16.msra.mxu1 %v1650_v35 }
 0x320   :  { %1499 = vmatprep.subr.bf16.mxu1 %v1651_v13 }
 0x323   :  { %1500 = vmatpush3.bf16.msra.mxu1 %v1651_v13  ;;  %v1207_v13 = vsub.s32 5, %v1704_v3 }
 0x324   :  { %1501 = vmatprep.subr.bf16.mxu1 %v1652_v15 }
 0x327   :  { %1502 = vmatpush3.bf16.msra.mxu1 %v1652_v15 }
 0x328   :  { %1503 = vmatprep.subr.bf16.mxu1 %v1653_v16 }
 0x32b   :  { %1504 = vmatpush3.bf16.msra.mxu1 %v1653_v16 }
 0x32c   :  { %1505 = vmatprep.subr.bf16.mxu1 %v1654_v17 }
 0x32f   :  { %1506 = vmatpush3.bf16.msra.mxu1 %v1654_v17 }
 0x330   :  { %1546 = vmatprep.subr.mxu1 %v1661_v10 }
 0x332   :  { %1508 = vmatmul.mubr.msk.bf16.vlgmr.msra.gmra.mrb[4].mxu1 %vm1285_vm1, %v1286_v22 }
 0x333   :  { %1547 = vmatpush3.msra.mxu1 %v1932_v56  ;;  %1548 = vmatprep.mubr.msk.f32.mxu1 %vm1660_vm7, %v1661_v10  ;;  %v1006_v56 = vadd.f32 %v1002_v25, %v1902_v30 }
 0x405   :  { %v1509_v26 = vpop.f32.mrb[4].mxu1 }
 0x406   :  { %v980_v31 = vpop.f32.mrb[5].mxu1  ;;  %v1009_v38 = vadd.f32 %v1509_v26, %v1005_v50 }
 0x407   :  { %v1007_v32 = vadd.f32 %v1003_v29, %v980_v31  ;;  %v1510_v34 = vpop.f32.mrb[6].mxu1 }
 0x408   :  { %v983_v37 = vpop.f32.mrb[7].mxu1  ;;  %v1010_v40 = vadd.f32 %v1510_v34, %v1006_v56  ;;  %v1022_v43 = vmul.f32 %v1009_v38, %v1009_v38 }
 0x409   :  { %v1008_v39 = vadd.f32 %v1004_v36, %v983_v37  ;;  %v1020_v10 = vmul.f32 %v1007_v32, %v1007_v32 }
 0x40a   :  { %v1023_v24 = vmul.f32 %v1010_v40, %v1010_v40 }
 0x40b   :  { %v1011_v41 = vadd.f32 %v1008_v39, %v1007_v32  ;;  %v1021_v42 = vmul.f32 %v1008_v39, %v1008_v39 }
 0x40d   :  { %v1012_v44 = vadd.f32 %v1011_v41, %v1009_v38  ;;  %v1024_v45 = vadd.f32 %v1021_v42, %v1020_v10 }
 0x40f   :  { %v1013_v46 = vadd.f32 %v1012_v44, %v1010_v40  ;;  %v1025_v47 = vadd.f32 %v1024_v45, %v1022_v43 }
 0x411   :  { %v1014_v27 = vrot.slane %v1013_v46, 4  ;;  %v1026_v48 = vadd.f32 %v1025_v47, %v1023_v24 }
 0x413   :  { %v1015_v49 = vadd.f32 %v1014_v27, %v1013_v46  ;;  %v1027_v51 = vrot.slane %v1026_v48, 4 }
 0x415   :  { %v1016_v28 = vrot.slane %v1015_v49, 2  ;;  %v1028_v52 = vadd.f32 %v1027_v51, %v1026_v48 }
 0x417   :  { %v1017_v53 = vadd.f32 %v1016_v28, %v1015_v49  ;;  %v1029_v54 = vrot.slane %v1028_v52, 2 }
 0x419   :  { %v1018_v30 = vrot.slane %v1017_v53, 1  ;;  %v1030_v55 = vadd.f32 %v1029_v54, %v1028_v52 }
 0x41b   :  { %v1031_v57 = vrot.slane %v1030_v55, 1  ;;  %v1019_v59 = vadd.f32 %v1018_v30, %v1017_v53 }
 0x41d   :  { %v1032_v60 = vadd.f32 %v1031_v57, %v1030_v55 }
 0x41f   :  { %v1033_v14 = vsel %vm435_vm8, %v1019_v59, %v1032_v60 }
 0x420   :  { %1544 = vmatmul.mubr.f32.vlgmr.msra.gmra.mrb[6].mxu0 %v1033_v14 }
 0x4f3   :  { %v1100_v58 = vpop.f32.mrb[6].mxu0 }
 0x4f4   :  { %v1545_v61 = vpop.f32.mrb[7].mxu0  ;;  %1549 = vmatmul.mubr.msk.f32.vlgmr.msra.gmra.mrb[2].mxu1 %vm507_vm9, %v1100_v58 }
 0x5c7   :  { %v1173_v62 = vpop.f32.mrb[2].mxu1 }
 0x5c8   :  { %v1177_v63 = vmul.f32 0.001953125, %v1173_v62  ;;  %v1550_v0 = vpop.f32.mrb[3].mxu1 }
 0x5ca   :  { %v1178_v1 = vmul.f32 %v1177_v63, %v1177_v63 }
 0x5cc   :  { %v1180_v2 = vrot.slane %v1178_v1, 7 }
 0x5ce   :  { %v1182_v4 = vsub.f32 %v1177_v63, %v1180_v2 }
 0x5d0   :  { %v1183_v5 = vadd.f32 1e-05, %v1182_v4 }
 0x5d2   :  { %1657 = vrsqrt.f32 %v1183_v5 }
 0x5dc   :  { %v1658_v6 = vpop.eup %1657 }
 0x5dd   :  { %v1186_v7 = vrot.slane %v1658_v6, 5 }
 0x5df   :  { %v1188_v8 = vmul.f32 %v1186_v7, %v1891_v20 }
 0x5e1   :  { %v1190_v11 = vrot.slane %v1188_v8, 4  ;;  %v1200_v33 = vrot.slane %v1188_v8, %v1199_v9 }
 0x5e3   :  { %v1192_v12 = vmul.f32 %v1190_v11, %v1177_v63  ;;  %v1201_v16 = vmul.f32 %v1200_v33, %v1007_v32  ;;  %v1202_v17 = vmul.f32 %v1200_v33, %v1008_v39  ;;  %v1203_v18 = vmul.f32 %v1200_v33, %v1009_v38 }
 0x5e4   :  { %v1204_v19 = vmul.f32 %v1200_v33, %v1010_v40 }
 0x5e5   :  { %v1194_v35 = vrot.slane %v1192_v12, 3 }
 0x5e7   :  { %v1196_v15 = vsub.f32 %v1891_v20, %v1194_v35 }
 0x5e9   :  { %v1208_v21 = vrot.slane %v1196_v15, %v1207_v13 }
 0x5eb   :  { %v1209_v22 = vadd.f32 %v1208_v21, %v1201_v16  ;;  %v1210_v23 = vadd.f32 %v1208_v21, %v1202_v17  ;;  %v1211_v25 = vadd.f32 %v1208_v21, %v1203_v18  ;;  %v1212_v26 = vadd.f32 %v1208_v21, %v1204_v19 }
 0x5ed   :  { %vm1213_vm3 = vcmp.ge.f32.partialorder %v1209_v22, 0.0  ;;  %vm1214_vm4 = vcmp.ge.f32.partialorder %v1210_v23, 0.0  ;;  %vm1215_vm5 = vcmp.ge.f32.partialorder %v1211_v25, 0.0  ;;  %vm1216_vm6 = vcmp.ge.f32.partialorder %v1212_v26, 0.0 }
 0x5ee   :  { %v1217_v29 = vmul.f32 0.01, %v1209_v22  ;;  %v1218_v31 = vmul.f32 0.01, %v1210_v23  ;;  %v1219_v50 = vmul.f32 0.01, %v1211_v25 }
 0x5ef   :  { %v1220_v34 = vmul.f32 0.01, %v1212_v26 }
 0x5f0   :  { %v1221_v3 = vsel %vm1213_vm3, %v1209_v22, %v1217_v29  ;;  %v1222_v36 = vsel %vm1214_vm4, %v1210_v23, %v1218_v31  ;;  %v1223_v20 = vsel %vm1215_vm5, %v1211_v25, %v1219_v50 }
 0x5f1   :  { %v1224_v32 = vsel %vm1216_vm6, %v1212_v26, %v1220_v34  ;;  %1225 = vst [vmem:[%s2093_s6] sm:$0xff] %v1221_v3  ;;  %1226 = vst [vmem:[%s2093_s6 + $0x8] sm:$0xff] %v1222_v36 }
 0x5f2   :  { %1227 = vst [vmem:[%s2093_s6 + $0x10] sm:$0xff] %v1223_v20  ;;  %1228 = vst [vmem:[%s2093_s6 + $0x18] sm:$0xff] %v1224_v32 }

</bundles_post_ra>
